<compile_context>
chip_gen: v5e
topology: v5e:2x2
jax: 0.10.0
libtpu: 0.0.40
codegen_flags: <defaults>
</compile_context>

<pallas_src>
import functools

import jax
import jax.numpy as jnp
from jax.experimental import pallas as pl
from jax.experimental.pallas import tpu as pltpu

_MIB = 1024 * 1024


def _vmem_capacity_bytes():
    """Returns (capacity_bytes, is_known). Falls back to v7x's 64 MiB when unknown."""
    try:
        info = pltpu.get_tpu_info()
        cap = int(getattr(info, "vmem_capacity_bytes", 0) or 0)
        if cap > 0:
            return cap, True
    except Exception:
        pass
    return 64 * _MIB, False


# ----------------------------------------------------------------------------
# Single-pass kernel: one full (C, S) slab per batch element per grid step.
# ----------------------------------------------------------------------------
def _feature_drop_single_pass_kernel(factor_ref, x_ref, o_ref):
    # x_ref block: (1, C, S); S = H*W is the lane-dense last dim.
    x = x_ref[...]                                                   # native dtype
    # Channel-mean attention map, accumulated in f32 (tiny (1, 1, S) result).
    att = jnp.mean(x, axis=1, keepdims=True, dtype=jnp.float32)      # (1, 1, S)
    # Per-batch spatial max * random factor (scalar factor lives in SMEM).
    threshold = jnp.max(att) * factor_ref[0]
    # Strict '<': everything at / above the threshold is dropped.
    o_ref[...] = jnp.where(att < threshold, x, jnp.zeros_like(x))    # broadcast over C


# ----------------------------------------------------------------------------
# Two-pass fallback for slabs too large for VMEM.
# Pass A: per-batch threshold (reduction over spatial tiles, tail-masked).
# ----------------------------------------------------------------------------
def _threshold_kernel(factor_ref, x_ref, thr_ref, *, s_size, s_tile):
    s = pl.program_id(1)                      # spatial-tile (reduction) axis

    @pl.when(s == 0)
    def _():
        thr_ref[...] = jnp.full(thr_ref.shape, -jnp.inf, thr_ref.dtype)

    att = jnp.mean(x_ref[...], axis=1, dtype=jnp.float32)            # (1, s_tile)
    # Mask out-of-range (padded tail) lanes before the max.
    lane = jax.lax.broadcasted_iota(jnp.int32, att.shape, 1)
    valid = (s * s_tile + lane) < s_size
    att = jnp.where(valid, att, -jnp.inf)
    thr_ref[...] = jnp.maximum(thr_ref[...], jnp.max(att))

    @pl.when(s == pl.num_programs(1) - 1)
    def _():
        thr_ref[...] = thr_ref[...] * factor_ref[0]


# Pass B: fully-parallel tiled masking (recomputes the channel mean locally).
# Out-of-range output lanes of the final tile are clipped on writeback, so no
# explicit tail mask is needed here.
def _mask_kernel(thr_ref, x_ref, o_ref):
    x = x_ref[...]                                                   # (1, C, s_tile)
    att = jnp.mean(x, axis=1, keepdims=True, dtype=jnp.float32)      # (1, 1, s_tile)
    thr = thr_ref[pl.program_id(0)]
    o_ref[...] = jnp.where(att < thr, x, jnp.zeros_like(x))


def _pick_s_tile(S, C, itemsize, budget_bytes, *, bufs, max_tile=None):
    """Largest lane-dense spatial tile whose pipelined buffers fit `budget_bytes`.

    `bufs` = live VMEM copies the pipeline keeps (2: input-only double buffer for
    the threshold pass; 4: in + out for the mask pass). Returns either the full
    row S (legal: block dim == array dim) or a multiple of 128 (< S); the grid
    uses pl.cdiv so S need not divide exactly (tail tile is masked / clipped).
    """
    if max_tile is None:
        max_tile = S
    if S <= 128:
        return S
    if max_tile >= S and bufs * C * S * itemsize <= budget_bytes:
        return S
    best = 128  # TODO(synk): if even a 128-lane tile overflows the budget (huge C),
                # channel tiling with a stored attention map would be needed.
    t = 256
    while t < S and t <= max_tile:
        if bufs * C * t * itemsize <= budget_bytes:
            best = t
        t += 128
    return best


def feature_drop(x, factor, *, vmem_budget_bytes=None, donate_x=False):
    """x: (B, C, H, W); factor: (1,) float32 scalar in [0.7, 0.9)."""
    B, C, H, W = x.shape
    S = H * W
    itemsize = jnp.dtype(x.dtype).itemsize
    x3 = x.reshape(B, C, S)                 # layout plumbing: lane-dense last dim

    # Generation-aware VMEM budgeting.
    cap, cap_known = _vmem_capacity_bytes()           # 128 MiB (v5e/v6e) / 64 MiB (v7x)
    vmem_limit_cap = int(cap * 0.85)                  # compiler / internal-scratch headroom
    if vmem_budget_bytes is None:
        vmem_budget_bytes = max(16 * _MIB, vmem_limit_cap - 4 * _MIB)

    slab_bytes = C * S * itemsize
    single_pass_vmem = 4 * slab_bytes                 # in + out, double-buffered

    # v7x heuristic (2 TCs/chip): with B == 1 a grid of (1,) gives the second
    # TensorCore nothing to do and exposes the slab DMA; prefer the tiled,
    # fully-parallel two-pass path in that regime.
    is_v7x_like = cap_known and cap <= 64 * _MIB
    force_two_pass = is_v7x_like and B == 1 and S >= 1024

    cost_single = pl.CostEstimate(flops=2 * B * C * S, transcendentals=0,
                                  bytes_accessed=2 * B * slab_bytes)
    aliases = {1: 0} if donate_x else {}

    if (not force_two_pass) and single_pass_vmem <= vmem_budget_bytes:
        # Single pass: minimum HBM traffic (read x once, write once).
        vmem_limit = max(16 * _MIB,
                         min(vmem_limit_cap, single_pass_vmem + 2 * _MIB))
        out3 = pl.pallas_call(
            _feature_drop_single_pass_kernel,
            out_shape=jax.ShapeDtypeStruct((B, C, S), x.dtype),
            grid=(B,),
            in_specs=[
                pl.BlockSpec(memory_space=pltpu.MemorySpace.SMEM),      # factor scalar
                pl.BlockSpec((1, C, S), lambda b: (b, 0, 0)),           # one batch / step
            ],
            out_specs=pl.BlockSpec((1, C, S), lambda b: (b, 0, 0)),
            compiler_params=pltpu.CompilerParams(
                dimension_semantics=("parallel",),
                vmem_limit_bytes=vmem_limit),
            cost_estimate=cost_single,
            input_output_aliases=aliases,
        )(factor, x3)
        return out3.reshape(B, C, H, W)

    # ---- Two-pass path: bounded VMEM + more parallel grid work --------------
    tile_cap = None
    if force_two_pass:
        # Keep >= ~4 spatial tiles so the (B, n_s) parallel grid feeds both cores.
        tile_cap = max(512, 128 * pl.cdiv(pl.cdiv(S, 4), 128))

    # Pass A only keeps an input double-buffer (2x); pass B keeps in + out (4x).
    s_tile_a = _pick_s_tile(S, C, itemsize, vmem_budget_bytes, bufs=2, max_tile=tile_cap)
    s_tile_b = _pick_s_tile(S, C, itemsize, vmem_budget_bytes, bufs=4, max_tile=tile_cap)
    n_s_a = pl.cdiv(S, s_tile_a)
    n_s_b = pl.cdiv(S, s_tile_b)

    vmem_limit_a = max(16 * _MIB,
                       min(vmem_limit_cap, 2 * C * s_tile_a * itemsize + 2 * _MIB))
    vmem_limit_b = max(16 * _MIB,
                       min(vmem_limit_cap, 4 * C * s_tile_b * itemsize + 2 * _MIB))

    cost_thr = pl.CostEstimate(flops=B * C * S, transcendentals=0,
                               bytes_accessed=B * slab_bytes + 4 * B)
    cost_mask = pl.CostEstimate(flops=2 * B * C * S, transcendentals=0,
                                bytes_accessed=2 * B * slab_bytes + 4 * B)

    thr3 = pl.pallas_call(
        functools.partial(_threshold_kernel, s_size=S, s_tile=s_tile_a),
        out_shape=jax.ShapeDtypeStruct((B, 1, 1), jnp.float32),
        grid=(B, n_s_a),
        in_specs=[
            pl.BlockSpec(memory_space=pltpu.MemorySpace.SMEM),          # factor scalar
            pl.BlockSpec((1, C, s_tile_a), lambda b, s: (b, 0, s)),
        ],
        out_specs=pl.BlockSpec((1, 1, 1), lambda b, s: (b, 0, 0)),      # resident acc
        compiler_params=pltpu.CompilerParams(
            dimension_semantics=("parallel", "arbitrary"),
            vmem_limit_bytes=vmem_limit_a),
        cost_estimate=cost_thr,
    )(factor, x3)
    thr = thr3.reshape(B)                                               # (B,) f32

    out3 = pl.pallas_call(
        _mask_kernel,
        out_shape=jax.ShapeDtypeStruct((B, C, S), x.dtype),
        grid=(B, n_s_b),
        in_specs=[
            pl.BlockSpec(memory_space=pltpu.MemorySpace.SMEM),          # per-batch thresholds
            pl.BlockSpec((1, C, s_tile_b), lambda b, s: (b, 0, s)),
        ],
        out_specs=pl.BlockSpec((1, C, s_tile_b), lambda b, s: (b, 0, s)),
        compiler_params=pltpu.CompilerParams(
            dimension_semantics=("parallel", "parallel"),
            vmem_limit_bytes=vmem_limit_b),
        cost_estimate=cost_mask,
        input_output_aliases=aliases,
    )(thr, x3)
    return out3.reshape(B, C, H, W)


def feature_drop_ref(x, factor):
    """Pure-JAX reference mirroring the PyTorch forward."""
    attention = jnp.mean(x, axis=1, keepdims=True)                     # (B,1,H,W)
    max_val = jnp.max(attention.reshape(x.shape[0], -1), axis=1)       # (B,)
    threshold = (max_val * factor[0]).reshape(-1, 1, 1, 1)             # (B,1,1,1)
    drop_mask = (attention < threshold).astype(x.dtype)
    return x * drop_mask


if __name__ == "__main__":
    key = jax.random.PRNGKey(0)
    kx, kf, kx2 = jax.random.split(key, 3)

    B, C, H, W = 2, 4, 16, 16
    x = jax.random.normal(kx, (B, C, H, W), dtype=jnp.float32)

    # Deterministic stand-in for np.random.uniform(0.7, 0.9) (one scalar / call).
    factor = jax.random.uniform(kf, (1,), dtype=jnp.float32,
                                minval=0.7, maxval=0.9)

    ref = feature_drop_ref(x, factor)

    # Single-pass (generation-aware budget) path.
    out = jax.block_until_ready(feature_drop(x, factor))
    assert out.shape == x.shape and out.dtype == x.dtype
    assert jnp.allclose(out, ref, atol=1e-6), "single-pass mismatch vs reference"

    # Force the tiled two-pass path and check it too.
    out2 = jax.block_until_ready(feature_drop(x, factor, vmem_budget_bytes=0))
    assert jnp.allclose(out2, ref, atol=1e-6), "two-pass mismatch vs reference"

    # Donated-input (input_output_aliases) variant.
    out3 = jax.block_until_ready(feature_drop(x, factor, donate_x=True))
    assert jnp.allclose(out3, ref, atol=1e-6), "aliased-output mismatch vs reference"

    # Odd spatial size: exercises the cdiv grid + tail-masked reduction.
    xo = jax.random.normal(kx2, (2, 4, 12, 12), dtype=jnp.float32)
    refo = feature_drop_ref(xo, factor)
    outo = jax.block_until_ready(feature_drop(xo, factor, vmem_budget_bytes=0))
    assert jnp.allclose(outo, refo, atol=1e-6), "tail-masked two-pass mismatch"

    print("KERNEL_OK")
</pallas_src>

<mosaic_0001>
module attributes {stable_mosaic.version = 11 : i64} {
  func.func @_feature_drop_single_pass_kernel(%arg0: i32, %arg1: memref<1xf32, #tpu.memory_space<smem>>, %arg2: memref<1x4x256xf32, #tpu.memory_space<vmem>>, %arg3: memref<1x4x256xf32, #tpu.memory_space<vmem>>) attributes {dimension_semantics = [#tpu.dimension_semantics<parallel>], iteration_bounds = array<i64: 2>, scalar_prefetch = 0 : i64, scratch_operands = 0 : i64, tpu.core_type = #tpu.core_type<tc>, window_params = [{transform_indices = @transform_0, window_bounds = array<i64: 1>}, {transform_indices = @transform_1, window_bounds = array<i64: 1, 4, 256>}, {transform_indices = @transform_2, window_bounds = array<i64: 1, 4, 256>}]} {
    %c0 = arith.constant 0 : index
    %c0_0 = arith.constant 0 : index
    %c0_1 = arith.constant 0 : index
    %0 = vector.load %arg2[%c0, %c0_0, %c0_1] : memref<1x4x256xf32, #tpu.memory_space<vmem>>, vector<1x4x256xf32>
    %cst = arith.constant dense<0.000000e+00> : vector<1x256xf32>
    %1 = vector.multi_reduction <add>, %0, %cst [1] : vector<1x4x256xf32> to vector<1x256xf32>
    %2 = vector.shape_cast %1 : vector<1x256xf32> to vector<1x1x256xf32>
    %cst_2 = arith.constant 4.000000e+00 : f32
    %3 = vector.broadcast %cst_2 : f32 to vector<1x1x256xf32>
    %4 = arith.divf %2, %3 : vector<1x1x256xf32>
    %5 = vector.shape_cast %4 : vector<1x1x256xf32> to vector<1x1x1x256xf32>
    %cst_3 = arith.constant dense<0xFF800000> : vector<1xf32>
    %6 = vector.multi_reduction <maximumf>, %5, %cst_3 [1, 2, 3] : vector<1x1x1x256xf32> to vector<1xf32>
    %7 = vector.shape_cast %6 : vector<1xf32> to vector<1x1x1x1xf32>
    %8 = vector.extract %7[0, 0, 0, 0] : f32 from vector<1x1x1x1xf32>
    %c0_4 = arith.constant 0 : index
    %9 = memref.load %arg1[%c0_4] : memref<1xf32, #tpu.memory_space<smem>>
    %10 = arith.mulf %8, %9 : f32
    %11 = vector.broadcast %10 : f32 to vector<1x1x256xf32>
    %12 = arith.cmpf olt, %4, %11 : vector<1x1x256xf32>
    %cst_5 = arith.constant 0.000000e+00 : f32
    %13 = vector.broadcast %cst_5 : f32 to vector<1x4x256xf32>
    %14 = vector.shape_cast %12 : vector<1x1x256xi1> to vector<1x1x256xi1>
    %15 = vector.broadcast %14 : vector<1x1x256xi1> to vector<1x4x256xi1>
    %16 = arith.select %15, %0, %13 : vector<1x4x256xi1>, vector<1x4x256xf32>
    %c0_6 = arith.constant 0 : index
    %c0_7 = arith.constant 0 : index
    %c0_8 = arith.constant 0 : index
    %17 = vector.load %arg3[%c0_6, %c0_7, %c0_8] : memref<1x4x256xf32, #tpu.memory_space<vmem>>, vector<1x4x256xf32>
    tpu.vector_store %arg3[%c0_6, %c0_7, %c0_8], %16 {strides = array<i32>} : memref<1x4x256xf32, #tpu.memory_space<vmem>>, vector<1x4x256xf32>,
    return
  }
  func.func @transform_0(%arg0: i32) -> i32 {
    %c0_i32 = arith.constant 0 : i32
    %c0_i32_0 = arith.constant 0 : i32
    return %c0_i32 : i32
  }
  func.func @transform_1(%arg0: i32) -> (i32, i32, i32) {
    %c0_i32 = arith.constant 0 : i32
    %c0_i32_0 = arith.constant 0 : i32
    %c0_i32_1 = arith.constant 0 : i32
    return %arg0, %c0_i32, %c0_i32_0 : i32, i32, i32
  }
  func.func @transform_2(%arg0: i32) -> (i32, i32, i32) {
    %c0_i32 = arith.constant 0 : i32
    %c0_i32_0 = arith.constant 0 : i32
    %c0_i32_1 = arith.constant 0 : i32
    return %arg0, %c0_i32, %c0_i32_0 : i32, i32, i32
  }
}

</mosaic_0001>

<bundles_post_ra>
// kernel: tpu_custom_call.1
= control target key start
LH: loop header
LB: loop body
LE: loop exit
PB: predicated region body
PF: predicated region fallthrough
CT: control target
= control target key end

     0   :  { %s625_s0 = inlined_call_operand.<no memory space> [shape: f32[1], index: 0, kind: input, shape index: {}]   ;;  %s626_s1 = inlined_call_operand.hbm [shape: f32[2,4,256], index: 1, kind: input, shape index: {}]   ;;  %s627_s2 = inlined_call_operand.hbm [shape: f32[2,4,256], index: 2, kind: output, shape index: {}]  }
   0x1   :  { %7 = sst [smem:[#allocation2]] %s625_s0 }
   0x2   :  { %8 = vsyncpa [#allocation4], 0 }
   0x3   :  { %10 = vsyncpa [#allocation4 + $0x1], 0 }
   0x4   :  { %11 = vsyncpa [#allocation5], 0 }
   0x5   :  { %13 = vsyncpa [#allocation5 + $0x1], 0  ;;  %s491_s11 = smov 0   ;;  %s493_s12 = smov 0  }
   0x6   :  { %s495_s13 = smov 0   ;;  %s497_s14 = smov 0  }
   0x7 LB: > { %s512_s0 = sadd.s32 4294967295, %s470_s14   ;;  %s307_s15 = sadd.s32 4294967294, %s470_s14   ;;  %s470_s14 = sphi %s497_s14, %s637_s14   ;;  %s466_s13 = sphi %s495_s13, %s636_s13   ;;  %s462_s12 = sphi %s493_s12, %s635_s12   ;;  %s458_s11 = sphi %s491_s11, %s634_s11  }
   0x8   : > { %s516_s16 = sadd.s32 1, %s470_s14   ;;  %s47_s17 = sadd.s32 1, %s466_s13 }
   0x9   : > { %s44_s18 = ssub.s32 %s470_s14, %s516_s16  ;;  %p54_p0 = scmp.ne.s32.totalorder %s466_s13, %s462_s12 }
   0xa   : > { %p45_p1 = scmp.eq.s32.totalorder %s44_s18, 0  ;;  %p55_p2 = scmp.eq.s32.totalorder %s470_s14, 0 }
   0xb   : > { %p60_p3 = scmp.ne.s32.totalorder %s462_s12, %s458_s11  ;;  %p61_p4 = scmp.eq.s32.totalorder %s512_s0, 0 }
   0xc   : > { %s528_s19 = scalar_select %p45_p1, %s466_s13, %s47_s17  }
   0xd   : > { %p530_p5 = por %p55_p2, %p54_p0  ;;  %p534_p6 = por %p61_p4, %p60_p3 }
   0xe   : > { %p84_p7 = scmp.eq.s32.totalorder %s512_s0, 1  ;;  %p90_p8 = scmp.eq.s32.totalorder %s307_s15, 1 }
   0xf   : > { %p337_p10 = scmp.lt.s32.totalorder %s470_s14, 2  ;;  %s113_s24 = sand.u32 1, %s466_s13  }
  0x10   : > { %p541_p11 = por %p84_p7, %p54_p0  ;;  %p545_p12 = por %p90_p8, %p60_p3 }
  0x11   : > { %s321_s25 = sshll.u32 %s470_s14, 3  ;;  %s310_s26 = sshll.u32 %s113_s24, 3 }
  0x12   : > { %s122_s29 = scalar_lea.hbm %s626_s1, %s321_s25  ;;  %s117_s3 = scalar_lea.vmem [#allocation3], %s310_s26 }
  0x13   : > { %s124_s30 = sshll.u32 %s122_s29, 4  ;;  %s126_s4 = sshll.u32 %s117_s3, 4  ;;  %s125_s30 = int_to_ptr.hbm [resolvable:$true] %s124_s30  ;;  %s127_s4 = int_to_ptr.vmem [resolvable:$true] %s126_s4 }
  0x14   : > { %p556_p13 = pnand %p337_p10, %p530_p5  ;;  %p313_p0 = scmp.ge.s32.totalorder %s470_s14, 1 }
  0x15   : > { %p131_p1 = scmp.lt.s32.totalorder %s470_s14, 3  ;;  %s114_s6 = scalar_lea.sflag [#allocation4], %s113_s24 }
  0x16   : > { %s374_s7 = sshra.s32 %s125_s30, 4  ;;  %p378_p3 = pneg %p556_p13  ;;  %s375_s7 = int_to_ptr.hbm [resolvable:$true] %s374_s7 }
  0x17   : > { %s376_s8 = scalar_lea.hbm %s375_s7, 8  ;;  %s381_s15 = scalar_lea.hbm %s626_s1, 16 }
  0x18   : > { %p377_p2 = scmp.ne.s32.totalorder %s375_s7, %s376_s8  ;;  %p382_p5 = scmp.lt.s32.totalorder %s375_s7, %s626_s1 }
  0x19   : > { %p383_p8 = scmp.lt.s32.totalorder %s381_s15, %s376_s8 }
  0x1a   : > { %p379_p4 = pnand %p378_p3, %p377_p2 }
  0x1b   : > { %p384_p10 = por %p383_p8, %p382_p5 }
  0x1c   : > { %p380_p7 = pneg %p379_p4 }
  0x1e   : > { %p385_p9 = pnand %p384_p10, %p380_p7 }
  0x20   : > { %388 = shalt.err (!%p385_p9)
}
  0x21   : > { %332 = dma.hbm_to_vmem [thread:$0]  (!%p556_p13), %s125_s30, 128, %s127_s4, %s114_s6  }
  0x22   : > { %p132_p2 = pnand %p313_p0, %p131_p1 }
  0x23   : > { %s577_s20 = sand.u32 (!%p132_p2), 1, %s462_s12  }
  0x24   : > { %135 = sbr.rel (%p132_p2) target bundleno = 246 (0xf6), region = 28  ;;  %s314_s24 = sshll.u32 (!%p132_p2), %s577_s20, 3 }
  0x25   : > { %s138_s25 = scalar_lea.sflag (!%p132_p2), [#allocation4], %s577_s20  ;;  %s141_s26 = scalar_lea.vmem (!%p132_p2), [#allocation3], %s314_s24 }
  0x29   : > { %449 = dma.done.wait (%p534_p6), %s138_s25, 128  }
  0x2a   : > { %451 = vsyncadd (%p534_p6), %s138_s25, 4294967168  ;;  %v472_v0 = vmov 4.0   ;;  %v163_v2 = vld [vmem:[%s141_s26] sm:$0xff]  ;;  %vm170_vm0 = vcmask 1043456   ;;  %s198_s21 = sld [smem:[#allocation2]]  ;;  %s322_s27 = sshll.u32 %s512_s0, 3 }
  0x2b   : > { %372 = vrcp.f32 %v472_v0  ;;  %165 = vst [vmem:[#allocation1] ss:$2 sm:$0xff] %v163_v2  ;;  %s232_s4 = scalar_lea.hbm %s627_s2, %s322_s27  ;;  %s162_s5 = scalar_lea.vmem [#allocation6], %s314_s24 }
  0x2c   : > { %s234_s6 = sshll.u32 %s162_s5, 4  ;;  %s236_s7 = sshll.u32 %s232_s4, 4  ;;  %s235_s6 = int_to_ptr.vmem [resolvable:$true] %s234_s6  ;;  %s237_s7 = int_to_ptr.hbm [resolvable:$true] %s236_s7 }
  0x2d   : > { %s221_s0 = scalar_lea.sflag [#allocation5], %s577_s20  ;;  %s418_s8 = sshra.s32 %s237_s7, 4  ;;  %s419_s8 = int_to_ptr.hbm [resolvable:$true] %s418_s8 }
  0x2e   : > { %s420_s9 = scalar_lea.hbm %s419_s8, 8  ;;  %s424_s17 = scalar_lea.hbm %s627_s2, 16 }
  0x2f   : > { %p421_p6 = scmp.ne.s32.totalorder %s419_s8, %s420_s9  ;;  %p425_p0 = scmp.lt.s32.totalorder %s419_s8, %s627_s2 }
  0x30   : > { %p426_p1 = scmp.lt.s32.totalorder %s424_s17, %s420_s9 }
  0x31   : > { %v373_v1 = vpop.eup %372  ;;  %p422_p9 = pnand %p421_p6, %p541_p11 }
  0x32   : > { %v186_v3 = vmul.f32 4.0, %v373_v1  ;;  %v166_v5 = vld.sshfl [vmem:[#allocation1] sm:$0xff pattern:$0x75316420]  ;;  %vm190_vm1 = vweird.f32 %v373_v1  ;;  %p427_p3 = por %p426_p1, %p425_p0 }
  0x33   : > { %v167_v6 = vld.sshfl [vmem:[#allocation1 + $0x8] sm:$0xff pattern:$0x75316420]  ;;  %v171_v7 = vsel %vm170_vm0, %v166_v5, 0.0  ;;  %p423_p13 = pneg %p422_p9 }
  0x34   : > { %v187_v4 = vsub.f32 1.0, %v186_v3  ;;  %v178_v8 = vsel %vm170_vm0, %v167_v6, 0.0  ;;  %207 = vst [vmem:[#allocation1] ss:$2 sm:$0xff] %v163_v2  ;;  %v172_v9 = vrot.slane %v171_v7, 4 }
  0x35   : > { %v179_v10 = vrot.slane %v178_v8, 4  ;;  %p428_p4 = pnand %p427_p3, %p423_p13 }
  0x36   : > { %v188_v11 = vmul.f32 %v373_v1, %v187_v4  ;;  %v173_v12 = vadd.f32 %v172_v9, %v171_v7 }
  0x37   : > { %v180_v13 = vadd.f32 %v179_v10, %v178_v8 }
  0x38   : > { %v174_v14 = vrot.slane %v173_v12, 2  ;;  %v189_v16 = vadd.f32 %v373_v1, %v188_v11 }
  0x39   : > { %v181_v15 = vrot.slane %v180_v13, 2 }
  0x3a   : > { %v175_v17 = vadd.f32 %v174_v14, %v173_v12  ;;  %v191_v21 = vsel %vm190_vm1, %v373_v1, %v189_v16 }
  0x3b   : > { %v182_v18 = vadd.f32 %v181_v15, %v180_v13  ;;  %v209_v28 = vld.sshfl [vmem:[#allocation1 + $0x8] sm:$0xff pattern:$0x75316420]  ;;  %v208_v30 = vld.sshfl [vmem:[#allocation1] sm:$0xff pattern:$0x75316420] }
  0x3c   : > { %v176_v19 = vrot.slane %v175_v17, 1 }
  0x3d   : > { %v183_v20 = vrot.slane %v182_v18, 1 }
  0x3e   : > { %v177_v22 = vadd.f32 %v176_v19, %v175_v17 }
  0x3f   : > { %v184_v23 = vadd.f32 %v183_v20, %v182_v18 }
  0x40   : > { %v192_v24 = vmul.f32 %v191_v21, %v177_v22 }
  0x41   : > { %v193_v25 = vmul.f32 %v191_v21, %v184_v23 }
  0x43   : > { %v194_v26 = vmax.f32 %v192_v24, %v193_v25 }
  0x45   : > { %195 = vmax.xlane.f32.xlu0 %v194_v26 }
  0xb8   : > { %v196_v27 = vpop.xlane.xlu0 %195 }
  0xb9   : > { %323 = vpush %v196_v27 }
  0xea   : > { %s324_s28 = spop %323 }
  0xeb   : > { %s199_s29 = smul.f32 %s324_s28, %s198_s21 }
  0xed   : > { %v200_v29 = vstv %s199_s29 }
  0xee   : > { %vm201_vm2 = vcmp.lt.f32.partialorder %v192_v24, %v200_v29  ;;  %vm202_vm3 = vcmp.lt.f32.partialorder %v193_v25, %v200_v29 }
  0xef   : > { %v213_v31 = vsel %vm202_vm3, %v209_v28, 0.0  ;;  %v212_v33 = vsel %vm201_vm2, %v208_v30, 0.0 }
  0xf0   : > { %v216_v32 = vrot.slane %v213_v31, 4 }
  0xf2   : > { %v217_v34 = vsel %vm170_vm0, %v212_v33, %v216_v32 }
  0xf3   : > { %219 = vst [vmem:[%s162_s5] sm:$0xff] %v217_v34 }
  0xf4   : > { %431 = shalt.err (!%p428_p4)
}
  0xf5   : > { %327 = dma.vmem_to_hbm [thread:$0]  (%p541_p11), %s235_s6, 128, %s237_s7, %s221_s0  }
  0xf6 PF: > { %s248_s20 = sand.u32 1, %s458_s11   ;;  %p633_p7 = scmp.ge.s32.totalorder %s470_s14, 2 }
  0xf7   : > { %s249_s25 = scalar_lea.sflag [#allocation5], %s248_s20 }
  0xf8   : > { %p334_p5 = pnand %p633_p7, %p545_p12 }
  0xfa   : > { %p335_p8 = pneg %p334_p5 }
  0xfc   : > { %453 = dma.done.wait (%p335_p8), %s249_s25, 128  }
  0xfd   : > { %455 = vsyncadd (%p335_p8), %s249_s25, 4294967168  ;;  %p16_p10 = scmp.ge.s32.totalorder %s516_s16, 4   ;;  %s634_s11 = smov %s462_s12 }
  0xfe   : > { %s635_s12 = smov %s466_s13  ;;  %s636_s13 = smov %s528_s19 }
  0xff   : > { %s637_s14 = smov %s516_s16  ;;  %18 = sbr.rel (!%p16_p10) target bundleno = 7 (0x7), region = 73 }
 0x104   :  { %255 = vsyncpa [#allocation4], 1 }
 0x105   :  { %257 = vsyncpa [#allocation4 + $0x1], 1 }
 0x106   :  { %258 = vsyncpa [#allocation5], 1 }
 0x107   :  { %260 = vsyncpa [#allocation5 + $0x1], 1 }

</bundles_post_ra>
